<compile_context>
chip_gen: v5e
topology: v5e:2x2
jax: 0.10.0
libtpu: 0.0.40
codegen_flags: <defaults>
</compile_context>

<pallas_src>
import jax
import jax.numpy as jnp
from jax.experimental import pallas as pl
from jax.experimental.pallas import tpu as pltpu


def _cdiv(a, b):
    return (a + b - 1) // b


def _round_up(x, m):
    return _cdiv(x, m) * m


def _sublane_tile(itemsize):
    # f32 -> 8, bf16 -> 16, int8/fp8 -> 32 (sub-32-bit dtypes pack along sublanes)
    return {4: 8, 2: 16, 1: 32}.get(itemsize, 8)


def _vmem_capacity_bytes():
    """Physical per-core VMEM capacity (hardware aware; conservative fallback)."""
    try:
        cap = getattr(pltpu.get_tpu_info(), "vmem_capacity_bytes", None)
        if cap:
            return int(cap)
    except Exception:
        pass
    return 64 << 20  # v7x per-TC size: safe lower bound on every TPU generation


# ---------------------------------------------------------------------------
# Kernels
# ---------------------------------------------------------------------------
def _encoder_kernel(x_ref, w_ref, b_ref, mean_ref, logvar_ref):
    """Whole-K path: one fused matmul per batch tile, no scratch."""
    y = jnp.dot(x_ref[...], w_ref[...], preferred_element_type=jnp.float32)
    y = y + b_ref[...]
    l_pad = mean_ref.shape[-1]
    mean_ref[...] = y[:, :l_pad].astype(mean_ref.dtype)
    logvar_ref[...] = y[:, l_pad:].astype(logvar_ref.dtype)


def _encoder_kernel_ktiled(x_ref, w_ref, b_ref, mean_ref, logvar_ref, acc_ref):
    """K-tiled path: accumulate partial products in f32, finalize on last K step."""
    k = pl.program_id(1)

    @pl.when(k == 0)
    def _():
        acc_ref[...] = jnp.zeros_like(acc_ref)

    acc_ref[...] += jnp.dot(x_ref[...], w_ref[...],
                            preferred_element_type=jnp.float32)

    @pl.when(k == pl.num_programs(1) - 1)
    def _():
        y = acc_ref[...] + b_ref[...]
        l_pad = mean_ref.shape[-1]
        mean_ref[...] = y[:, :l_pad].astype(mean_ref.dtype)
        logvar_ref[...] = y[:, l_pad:].astype(logvar_ref.dtype)


# ---------------------------------------------------------------------------
# One-time parameter preparation (hoisted out of the forward pass)
# ---------------------------------------------------------------------------
def prepare_params(w_mean, b_mean, w_var, b_var, *, dtype=None):
    """Fuse + pad the two Linear heads ONCE. Reuse the result across forwards.

    w_mean / w_var: (input_dim, latent_dim)  (= PyTorch FC_*.weight.T)
    b_mean / b_var: (latent_dim,)
    """
    K, L = w_mean.shape
    if dtype is None:
        dtype = w_mean.dtype
    itemsize = jnp.dtype(dtype).itemsize
    k_align = 256 if itemsize < 4 else 128   # MXU-native contraction alignment
    K_pad = _round_up(K, k_align)
    l_pad = _round_up(L, 128)                # lane-dense per-head output width

    w = jnp.zeros((K_pad, 2 * l_pad), dtype)
    w = w.at[:K, :L].set(w_mean.astype(dtype))
    w = w.at[:K, l_pad:l_pad + L].set(w_var.astype(dtype))

    b = jnp.zeros((1, 2 * l_pad), jnp.float32)
    b = b.at[0, :L].set(b_mean.astype(jnp.float32))
    b = b.at[0, l_pad:l_pad + L].set(b_var.astype(jnp.float32))

    return dict(w=w, b=b, K=K, L=L, K_pad=K_pad, l_pad=l_pad)


# ---------------------------------------------------------------------------
# Tiling / VMEM-budget selection
# ---------------------------------------------------------------------------
def _select_tiles(B, K_pad, n2, itemsize, budget, max_block_batch,
                  k_steps_override=None):
    sub = _sublane_tile(itemsize)
    k_align = 256 if itemsize < 4 else 128

    # Batch tile: as big as fits, but leave >=2 grid steps when B allows so the
    # "parallel" axis has something to shard across v7x's two TensorCores.
    bm = min(_round_up(B, sub), _round_up(max(max_block_batch, sub), sub))
    if B > sub:
        bm = min(bm, _round_up(_cdiv(B, 2), sub))

    m = K_pad // k_align

    def vmem_need(bm_, tk_, nk_):
        wbuf = 1 if nk_ == 1 else 2   # grid-invariant weight -> single-buffered
        return (2 * bm_ * tk_ * itemsize            # x tile, double-buffered
                + wbuf * tk_ * n2 * itemsize        # fused weight
                + 2 * bm_ * n2 * itemsize           # two outputs, double-buffered
                + (4 * bm_ * n2 if nk_ > 1 else 0)  # f32 accumulator scratch
                + 4 * n2                            # fused f32 bias
                + (1 << 20))                        # misc slack

    if k_steps_override is not None:
        nk = int(k_steps_override)
        tk = K_pad // nk
        assert K_pad % nk == 0 and tk % 128 == 0, "bad k_steps_override"
        return bm, tk, nk, vmem_need(bm, tk, nk)

    # Prefer whole-K; otherwise the smallest number of K steps that fits the budget.
    for nk in range(1, m + 1):
        if m % nk:
            continue
        tk = K_pad // nk
        if vmem_need(bm, tk, nk) <= budget:
            return bm, tk, nk, vmem_need(bm, tk, nk)

    # Fully K-tiled; shrink the batch tile until it fits.
    tk, nk = k_align, m
    while bm > sub and vmem_need(bm, tk, nk) > budget:
        bm = max(sub, _round_up(bm // 2, sub))
    return bm, tk, nk, vmem_need(bm, tk, nk)


# ---------------------------------------------------------------------------
# Forward pass
# ---------------------------------------------------------------------------
def vae_encoder_apply(params, x, *, max_block_batch=512, k_steps_override=None):
    """Pallas implementation of VAE_Encoder.forward using prepared (fused) params."""
    w, b = params["w"], params["b"]
    K, L = params["K"], params["L"]
    K_pad, l_pad = params["K_pad"], params["l_pad"]
    dtype = w.dtype
    itemsize = jnp.dtype(dtype).itemsize
    n2 = 2 * l_pad

    B = x.shape[0]
    assert x.shape[1] == K, f"expected input_dim={K}, got {x.shape[1]}"
    if x.dtype != dtype:
        x = x.astype(dtype)

    cap = _vmem_capacity_bytes()
    budget = max(cap - (8 << 20), 16 << 20)   # leave headroom below physical VMEM

    bm, tk, nk, _need = _select_tiles(B, K_pad, n2, itemsize, budget,
                                      max_block_batch, k_steps_override)

    b_pad = _round_up(B, bm)
    pad_rows = b_pad - B
    pad_cols = K_pad - K
    if pad_rows or pad_cols:
        x = jnp.pad(x, ((0, pad_rows), (0, pad_cols)))

    nb = b_pad // bm
    vmem_limit = int(budget)   # never exceeds physical capacity (v7x: ~56 MiB)

    cost = pl.CostEstimate(
        flops=2 * b_pad * K_pad * n2,
        transcendentals=0,
        bytes_accessed=itemsize * (b_pad * K_pad + K_pad * n2 + b_pad * n2) + 4 * n2,
    )
    out_shape = (jax.ShapeDtypeStruct((b_pad, l_pad), dtype),
                 jax.ShapeDtypeStruct((b_pad, l_pad), dtype))

    if nk == 1:
        grid_spec = pltpu.PrefetchScalarGridSpec(
            num_scalar_prefetch=0,
            grid=(nb,),
            in_specs=[
                pl.BlockSpec((bm, K_pad), lambda i: (i, 0)),
                # grid-invariant operands: single-buffered (halves dominant VMEM term)
                pl.BlockSpec((K_pad, n2), lambda i: (0, 0),
                             pipeline_mode=pl.Buffered(1)),
                pl.BlockSpec((1, n2), lambda i: (0, 0),
                             pipeline_mode=pl.Buffered(1)),
            ],
            out_specs=[
                pl.BlockSpec((bm, l_pad), lambda i: (i, 0)),
                pl.BlockSpec((bm, l_pad), lambda i: (i, 0)),
            ],
            scratch_shapes=[],
        )
        kernel = _encoder_kernel
        dim_sem = ("parallel",)
    else:
        grid_spec = pltpu.PrefetchScalarGridSpec(
            num_scalar_prefetch=0,
            grid=(nb, nk),
            in_specs=[
                pl.BlockSpec((bm, tk), lambda i, k: (i, k)),
                pl.BlockSpec((tk, n2), lambda i, k: (k, 0)),
                pl.BlockSpec((1, n2), lambda i, k: (0, 0),
                             pipeline_mode=pl.Buffered(1)),
            ],
            out_specs=[
                pl.BlockSpec((bm, l_pad), lambda i, k: (i, 0)),
                pl.BlockSpec((bm, l_pad), lambda i, k: (i, 0)),
            ],
            scratch_shapes=[pltpu.VMEM((bm, n2), jnp.float32)],
        )
        kernel = _encoder_kernel_ktiled
        dim_sem = ("parallel", "arbitrary")

    mean_p, logvar_p = pl.pallas_call(
        kernel,
        out_shape=out_shape,
        grid_spec=grid_spec,
        compiler_params=pltpu.CompilerParams(
            dimension_semantics=dim_sem,
            vmem_limit_bytes=vmem_limit,
        ),
        cost_estimate=cost,
    )(x, w, b)

    # Drop padding only when it exists (aligned shapes return kernel output directly,
    # avoiding an extra HBM round trip).
    if b_pad != B or l_pad != L:
        mean_p = mean_p[:B, :L]
        logvar_p = logvar_p[:B, :L]
    return mean_p, logvar_p


def vae_encoder(x, w_mean, b_mean, w_var, b_var, **kwargs):
    """One-off convenience wrapper. For production, call prepare_params() once and
    reuse it with vae_encoder_apply() so weight fusion/padding is not per-call."""
    return vae_encoder_apply(prepare_params(w_mean, b_mean, w_var, b_var), x, **kwargs)


def init_params(key, input_dim, latent_dim, dtype=jnp.float32):
    """Deterministic init mirroring torch.nn.init.trunc_normal_(w, 0, 0.01), bias=0."""
    k1, k2 = jax.random.split(key)
    w_mean = 0.01 * jax.random.truncated_normal(k1, -2.0, 2.0,
                                                (input_dim, latent_dim), dtype)
    w_var = 0.01 * jax.random.truncated_normal(k2, -2.0, 2.0,
                                               (input_dim, latent_dim), dtype)
    b_mean = jnp.zeros((latent_dim,), dtype)
    b_var = jnp.zeros((latent_dim,), dtype)
    return w_mean, b_mean, w_var, b_var


if __name__ == "__main__":
    key = jax.random.PRNGKey(0)
    kx, kp = jax.random.split(key)

    batch, input_dim, latent_dim = 16, 32, 16

    x = jax.random.normal(kx, (batch, input_dim), jnp.float32)
    w_mean, b_mean, w_var, b_var = init_params(kp, input_dim, latent_dim)

    # One-time (hoisted) parameter prep, reused across all forward calls.
    params = prepare_params(w_mean, b_mean, w_var, b_var)

    mean, log_var = vae_encoder_apply(params, x)
    jax.block_until_ready((mean, log_var))

    mean_ref = x @ w_mean + b_mean
    logvar_ref = x @ w_var + b_var
    assert mean.shape == (batch, latent_dim)
    assert log_var.shape == (batch, latent_dim)
    assert jnp.allclose(mean, mean_ref, atol=1e-5, rtol=1e-5)
    assert jnp.allclose(log_var, logvar_ref, atol=1e-5, rtol=1e-5)

    # Ragged (non-multiple-of-8) batch exercises the row-padding path.
    xr = jax.random.normal(kx, (batch + 3, input_dim), jnp.float32)
    mr, lr = vae_encoder_apply(params, xr)
    jax.block_until_ready((mr, lr))
    assert jnp.allclose(mr, xr @ w_mean + b_mean, atol=1e-5, rtol=1e-5)
    assert jnp.allclose(lr, xr @ w_var + b_var, atol=1e-5, rtol=1e-5)

    # Exercise the K-tiled accumulator path (what large input_dim selects on v7x).
    in2 = 256
    x2 = jax.random.normal(kx, (batch, in2), jnp.float32)
    wm2, bm2, wv2, bv2 = init_params(kp, in2, latent_dim)
    p2 = prepare_params(wm2, bm2, wv2, bv2)
    m2, l2 = vae_encoder_apply(p2, x2, k_steps_override=2)
    jax.block_until_ready((m2, l2))
    assert jnp.allclose(m2, x2 @ wm2 + bm2, atol=1e-4, rtol=1e-4)
    assert jnp.allclose(l2, x2 @ wv2 + bv2, atol=1e-4, rtol=1e-4)

    print("KERNEL_OK")
</pallas_src>

<mosaic_0001>
module attributes {stable_mosaic.version = 11 : i64} {
  func.func @_encoder_kernel(%arg0: i32, %arg1: memref<8x128xf32, #tpu.memory_space<vmem>>, %arg2: memref<128x256xf32, #tpu.memory_space<vmem>>, %arg3: memref<1x256xf32, #tpu.memory_space<vmem>>, %arg4: memref<8x128xf32, #tpu.memory_space<vmem>>, %arg5: memref<8x128xf32, #tpu.memory_space<vmem>>) attributes {dimension_semantics = [#tpu.dimension_semantics<parallel>], iteration_bounds = array<i64: 2>, scalar_prefetch = 0 : i64, scratch_operands = 0 : i64, tpu.core_type = #tpu.core_type<tc>, window_params = [{transform_indices = @transform_0, window_bounds = array<i64: 8, 128>}, {pipeline_mode = #tpu.pipeline_mode<synchronous>, transform_indices = @transform_1, window_bounds = array<i64: 128, 256>}, {pipeline_mode = #tpu.pipeline_mode<synchronous>, transform_indices = @transform_2, window_bounds = array<i64: 1, 256>}, {transform_indices = @transform_3, window_bounds = array<i64: 8, 128>}, {transform_indices = @transform_4, window_bounds = array<i64: 8, 128>}]} {
    %c0 = arith.constant 0 : index
    %c0_0 = arith.constant 0 : index
    %0 = vector.load %arg1[%c0, %c0_0] : memref<8x128xf32, #tpu.memory_space<vmem>>, vector<8x128xf32>
    %c0_1 = arith.constant 0 : index
    %c0_2 = arith.constant 0 : index
    %1 = vector.load %arg2[%c0_1, %c0_2] : memref<128x256xf32, #tpu.memory_space<vmem>>, vector<128x256xf32>
    %cst = arith.constant dense<0.000000e+00> : vector<8x256xf32>
    %2 = tpu.matmul %0, %1, %cst {dimension_numbers = #tpu.dot_dimension_numbers<[1], [0], [0], [1], [0, 0, 1, 1], [], []>} : vector<8x128xf32>, vector<128x256xf32>, vector<8x256xf32> -> vector<8x256xf32>
    %c0_3 = arith.constant 0 : index
    %c0_4 = arith.constant 0 : index
    %3 = vector.load %arg3[%c0_3, %c0_4] : memref<1x256xf32, #tpu.memory_space<vmem>>, vector<1x256xf32>
    %4 = vector.broadcast %3 : vector<1x256xf32> to vector<8x256xf32>
    %5 = arith.addf %2, %4 : vector<8x256xf32>
    %6 = vector.extract_strided_slice %5 {offsets = [0, 0], sizes = [8, 128], strides = [1, 1]} : vector<8x256xf32> to vector<8x128xf32>
    %c0_5 = arith.constant 0 : index
    %c0_6 = arith.constant 0 : index
    %7 = vector.load %arg4[%c0_5, %c0_6] : memref<8x128xf32, #tpu.memory_space<vmem>>, vector<8x128xf32>
    tpu.vector_store %arg4[%c0_5, %c0_6], %6 {strides = array<i32>} : memref<8x128xf32, #tpu.memory_space<vmem>>, vector<8x128xf32>,
    %8 = vector.extract_strided_slice %5 {offsets = [0, 128], sizes = [8, 128], strides = [1, 1]} : vector<8x256xf32> to vector<8x128xf32>
    %c0_7 = arith.constant 0 : index
    %c0_8 = arith.constant 0 : index
    %9 = vector.load %arg5[%c0_7, %c0_8] : memref<8x128xf32, #tpu.memory_space<vmem>>, vector<8x128xf32>
    tpu.vector_store %arg5[%c0_7, %c0_8], %8 {strides = array<i32>} : memref<8x128xf32, #tpu.memory_space<vmem>>, vector<8x128xf32>,
    return
  }
  func.func @transform_0(%arg0: i32) -> (i32, i32) {
    %c0_i32 = arith.constant 0 : i32
    %c0_i32_0 = arith.constant 0 : i32
    return %arg0, %c0_i32 : i32, i32
  }
  func.func @transform_1(%arg0: i32) -> (i32, i32) {
    %c0_i32 = arith.constant 0 : i32
    %c0_i32_0 = arith.constant 0 : i32
    %c0_i32_1 = arith.constant 0 : i32
    return %c0_i32, %c0_i32_0 : i32, i32
  }
  func.func @transform_2(%arg0: i32) -> (i32, i32) {
    %c0_i32 = arith.constant 0 : i32
    %c0_i32_0 = arith.constant 0 : i32
    %c0_i32_1 = arith.constant 0 : i32
    return %c0_i32, %c0_i32_0 : i32, i32
  }
  func.func @transform_3(%arg0: i32) -> (i32, i32) {
    %c0_i32 = arith.constant 0 : i32
    %c0_i32_0 = arith.constant 0 : i32
    return %arg0, %c0_i32 : i32, i32
  }
  func.func @transform_4(%arg0: i32) -> (i32, i32) {
    %c0_i32 = arith.constant 0 : i32
    %c0_i32_0 = arith.constant 0 : i32
    return %arg0, %c0_i32 : i32, i32
  }
}

</mosaic_0001>

<bundles_post_ra>
// kernel: tpu_custom_call.1
= control target key start
LH: loop header
LB: loop body
LE: loop exit
PB: predicated region body
PF: predicated region fallthrough
CT: control target
= control target key end

     0   :  { %10 = vsyncpa [#allocation3], 0  ;;  %s989_s0 = inlined_call_operand.hbm [shape: f32[16,128], index: 0, kind: input, shape index: {}]   ;;  %s990_s1 = inlined_call_operand.hbm [shape: f32[128,256], index: 1, kind: input, shape index: {}]   ;;  %s991_s2 = inlined_call_operand.hbm [shape: f32[1,256], index: 2, kind: input, shape index: {}]   ;;  %s992_s3 = inlined_call_operand.hbm [shape: f32[16,128], index: 3, kind: output, shape index: {0}]   ;;  %s993_s4 = inlined_call_operand.hbm [shape: f32[16,128], index: 4, kind: output, shape index: {1}]  }
   0x1   :  { %12 = vsyncpa [#allocation3 + $0x1], 0 }
   0x2   :  { %13 = vsyncpa [#allocation6], 0 }
   0x3   :  { %14 = vsyncpa [#allocation4], 0 }
   0x4   :  { %16 = vsyncpa [#allocation4 + $0x1], 0 }
   0x5   :  { %17 = vsyncpa [#allocation10], 0 }
   0x6   :  { %19 = vsyncpa [#allocation10 + $0x1], 0  ;;  %s811_s15 = smov 0   ;;  %s813_s16 = smov 0  }
   0x7   :  { %s815_s17 = smov 0   ;;  %s817_s18 = smov 0  }
   0x8 LB: > { %s161_s21 = sshll.u32 %s990_s1, 4  ;;  %s835_s22 = sadd.s32 4294967295, %s780_s18   ;;  %s780_s18 = sphi %s817_s18, %s1004_s18   ;;  %s776_s17 = sphi %s815_s17, %s1003_s17   ;;  %s772_s16 = sphi %s813_s16, %s1002_s16   ;;  %s768_s15 = sphi %s811_s15, %s1001_s15   ;;  %s162_s21 = int_to_ptr.hbm [resolvable:$true] %s161_s21 }
   0x9   : > { %p496_p0 = scmp.ge.s32.totalorder %s780_s18, 1  ;;  %p46_p1 = scmp.eq.s32.totalorder %s835_s22, 0 }
   0xa   : > { %p150_p2 = scmp.lt.s32.totalorder %s780_s18, 3  ;;  %s782_s24 = smov [#allocation5]  }
   0xb   : > { %s163_s25 = sshll.u32 %s782_s24, 4  ;;  %s176_s28 = sshll.u32 %s991_s2, 4  ;;  %s164_s25 = int_to_ptr.vmem [resolvable:$true] %s163_s25  ;;  %s177_s28 = int_to_ptr.hbm [resolvable:$true] %s176_s28 }
   0xc   : > { %p840_p3 = pnand %p496_p0, %p150_p2  ;;  %s783_s29 = smov [#allocation7]  }
   0xd   : > { %s178_s30 = sshll.u32 %s783_s29, 4  ;;  %s784_s5 = smov 256   ;;  %s179_s30 = int_to_ptr.vmem [resolvable:$true] %s178_s30 }
   0xe   : > { %p528_p4 = pneg %p840_p3  ;;  %s785_s6 = smov 16  }
   0xf   : > { %s495_s7 = sadd.s32 4294967294, %s780_s18   ;;  %s854_s8 = sadd.s32 1, %s780_s18  }
  0x10   : > { %p529_p6 = pnand %p528_p4, %p46_p1  ;;  %s29_s9 = ssub.s32 %s780_s18, %s854_s8 }
  0x11   : > { %s32_s10 = sadd.s32 1, %s776_s17  ;;  %p30_p7 = scmp.eq.s32.totalorder %s29_s9, 0 }
  0x12   : > { %531 = dma.hbm_to_vmem [thread:$0]  (!%p529_p6), %s162_s21, 4096, %s164_s25, [#allocation6], %s784_s5, %s784_s5, %s785_s6  }
  0x13   : > { %534 = dma.hbm_to_vmem [thread:$0]  (!%p529_p6), %s177_s28, 32, %s179_s30, [#allocation6]  }
  0x14   : > { %p39_p8 = scmp.ne.s32.totalorder %s776_s17, %s772_s16  ;;  %p40_p9 = scmp.eq.s32.totalorder %s780_s18, 0 }
  0x15   : > { %p45_p10 = scmp.ne.s32.totalorder %s772_s16, %s768_s15  ;;  %p111_p13 = scmp.eq.s32.totalorder %s835_s22, 1 }
  0x16   : > { %s865_s11 = scalar_select %p30_p7, %s776_s17, %s32_s10  }
  0x17   : > { %p867_p11 = por %p40_p9, %p39_p8  ;;  %p873_p12 = por %p46_p1, %p45_p10 }
  0x18   : > { %p117_p0 = scmp.eq.s32.totalorder %s495_s7, 1  ;;  %p548_p2 = scmp.lt.s32.totalorder %s780_s18, 2 }
  0x19   : > { %s189_s14 = sand.u32 1, %s776_s17   ;;  %p880_p4 = por %p111_p13, %p39_p8 }
  0x1a   : > { %p884_p6 = por %p117_p0, %p45_p10  ;;  %s500_s21 = sshll.u32 %s189_s14, 3 }
  0x1b   : > { %s501_s24 = sshll.u32 %s780_s18, 3  ;;  %s193_s28 = scalar_lea.vmem [#allocation2], %s500_s21 }
  0x1c   : > { %s197_s27 = scalar_lea.hbm %s989_s0, %s501_s24  ;;  %s201_s29 = sshll.u32 %s193_s28, 4  ;;  %s202_s29 = int_to_ptr.vmem [resolvable:$true] %s201_s29 }
  0x1d   : > { %s199_s30 = sshll.u32 %s197_s27, 4  ;;  %p894_p7 = pnand %p548_p2, %p867_p11  ;;  %s200_s30 = int_to_ptr.hbm [resolvable:$true] %s199_s30 }
  0x1e   : > { %s190_s6 = scalar_lea.sflag [#allocation3], %s189_s14  ;;  %s648_s7 = sshra.s32 %s200_s30, 4  ;;  %s649_s7 = int_to_ptr.hbm [resolvable:$true] %s648_s7 }
  0x1f   : > { %s650_s9 = scalar_lea.hbm %s649_s7, 8  ;;  %p652_p9 = pneg %p894_p7 }
  0x20   : > { %p651_p8 = scmp.ne.s32.totalorder %s649_s7, %s650_s9  ;;  %s655_s24 = scalar_lea.hbm %s989_s0, 16 }
  0x21   : > { %p656_p11 = scmp.lt.s32.totalorder %s649_s7, %s989_s0  ;;  %p657_p0 = scmp.lt.s32.totalorder %s655_s24, %s650_s9 }
  0x22   : > { %p653_p10 = pnand %p652_p9, %p651_p8 }
  0x23   : > { %p658_p2 = por %p657_p0, %p656_p11 }
  0x24   : > { %p654_p13 = pneg %p653_p10 }
  0x26   : > { %p659_p5 = pnand %p658_p2, %p654_p13 }
  0x28   : > { %662 = shalt.err (!%p659_p5)
}
  0x29   : > { %538 = dma.hbm_to_vmem [thread:$0]  (!%p894_p7), %s200_s30, 128, %s202_s29, %s190_s6  }
  0x2a   : > { %210 = sbr.rel (%p840_p3) target bundleno = 226 (0xe2), region = 32  ;;  %s911_s14 = sand.u32 (!%p840_p3), 1, %s772_s16  }
  0x2b   : > { %s914_s26 = sshll.u32 (!%p840_p3), %s911_s14, 3  ;;  %s213_s27 = scalar_lea.sflag (!%p840_p3), [#allocation3], %s911_s14 }
  0x2c   : > { %s216_s28 = scalar_lea.vmem (!%p840_p3), [#allocation2], %s914_s26 }
  0x2f   : > { %751 = dma.done.wait (%p873_p12), %s213_s27, 128  }
  0x30   : > { %753 = vsyncadd (%p873_p12), %s213_s27, 4294967168 }
  0x31   : > { %755 = dma.done.wait (%p46_p1), [#allocation6], 4128  }
  0x32   : > { %757 = vsyncadd (%p46_p1), [#allocation6], 4294963168  ;;  %v288_v0 = vld [vmem:[#allocation5 + $0xf0] sm:$0xff]  ;;  %v289_v1 = vld [vmem:[#allocation5 + $0xf8] sm:$0xff]  ;;  %s510_s23 = sshll.u32 %s835_s22, 3  ;;  %s249_s9 = scalar_lea.vmem [#allocation8], %s914_s26 }
  0x33   : > { %v286_v2 = vld [vmem:[#allocation5 + $0xe0] sm:$0xff]  ;;  %296 = vmatpush.msra.mxu0 %v288_v0  ;;  %316 = vmatpush.msra.mxu1 %v289_v1  ;;  %v287_v3 = vld [vmem:[#allocation5 + $0xe8] sm:$0xff]  ;;  %v284_v4 = vld [vmem:[#allocation5 + $0xd0] sm:$0xff]  ;;  %s354_s30 = scalar_lea.hbm %s992_s3, %s510_s23  ;;  %s368_s7 = scalar_lea.hbm %s993_s4, %s510_s23 }
  0x34   : > { %v285_v5 = vld [vmem:[#allocation5 + $0xd8] sm:$0xff]  ;;  %v282_v6 = vld [vmem:[#allocation5 + $0xc0] sm:$0xff]  ;;  %v283_v7 = vld [vmem:[#allocation5 + $0xc8] sm:$0xff]  ;;  %s936_s10 = sshll.u32 %s249_s9, 4  ;;  %s358_s21 = sshll.u32 %s354_s30, 4  ;;  %s357_s10 = int_to_ptr.vmem [resolvable:$true] %s936_s10  ;;  %s359_s21 = int_to_ptr.hbm [resolvable:$true] %s358_s21 }
  0x35   : > { %297 = vmatpush.msra.mxu0 %v286_v2  ;;  %317 = vmatpush.msra.mxu1 %v287_v3  ;;  %v280_v8 = vld [vmem:[#allocation5 + $0xb0] sm:$0xff]  ;;  %v281_v9 = vld [vmem:[#allocation5 + $0xb8] sm:$0xff]  ;;  %v278_v10 = vld [vmem:[#allocation5 + $0xa0] sm:$0xff]  ;;  %s256_s24 = scalar_lea.vmem [#allocation9], %s914_s26  ;;  %s372_s22 = sshll.u32 %s368_s7, 4  ;;  %s943_s22 = int_to_ptr.hbm [resolvable:$true] %s372_s22 }
  0x36   : > { %v279_v11 = vld [vmem:[#allocation5 + $0xa8] sm:$0xff]  ;;  %v276_v12 = vld [vmem:[#allocation5 + $0x90] sm:$0xff]  ;;  %v277_v13 = vld [vmem:[#allocation5 + $0x98] sm:$0xff]  ;;  %s939_s25 = sshll.u32 %s256_s24, 4  ;;  %s339_s12 = scalar_lea.sflag [#allocation4], %s911_s14  ;;  %s371_s25 = int_to_ptr.vmem [resolvable:$true] %s939_s25 }
  0x37   : > { %298 = vmatpush.msra.mxu0 %v284_v4  ;;  %318 = vmatpush.msra.mxu1 %v285_v5  ;;  %v274_v14 = vld [vmem:[#allocation5 + $0x80] sm:$0xff]  ;;  %v275_v15 = vld [vmem:[#allocation5 + $0x88] sm:$0xff]  ;;  %v272_v16 = vld [vmem:[#allocation5 + $0x70] sm:$0xff]  ;;  %s692_s27 = sshra.s32 %s359_s21, 4  ;;  %s698_s13 = scalar_lea.hbm %s992_s3, 16  ;;  %s693_s27 = int_to_ptr.hbm [resolvable:$true] %s692_s27 }
  0x38   : > { %v273_v17 = vld [vmem:[#allocation5 + $0x78] sm:$0xff]  ;;  %v270_v18 = vld [vmem:[#allocation5 + $0x60] sm:$0xff]  ;;  %v271_v19 = vld [vmem:[#allocation5 + $0x68] sm:$0xff]  ;;  %s694_s26 = scalar_lea.hbm %s693_s27, 8  ;;  %p699_p12 = scmp.lt.s32.totalorder %s693_s27, %s992_s3 }
  0x39   : > { %299 = vmatpush.msra.mxu0 %v282_v6  ;;  %319 = vmatpush.msra.mxu1 %v283_v7  ;;  %v268_v20 = vld [vmem:[#allocation5 + $0x50] sm:$0xff]  ;;  %v269_v21 = vld [vmem:[#allocation5 + $0x58] sm:$0xff]  ;;  %v266_v22 = vld [vmem:[#allocation5 + $0x40] sm:$0xff]  ;;  %p695_p1 = scmp.ne.s32.totalorder %s693_s27, %s694_s26  ;;  %p700_p7 = scmp.lt.s32.totalorder %s698_s13, %s694_s26 }
  0x3a   : > { %v267_v23 = vld [vmem:[#allocation5 + $0x48] sm:$0xff]  ;;  %v264_v24 = vld [vmem:[#allocation5 + $0x30] sm:$0xff]  ;;  %v265_v25 = vld [vmem:[#allocation5 + $0x38] sm:$0xff] }
  0x3b   : > { %300 = vmatpush.msra.mxu0 %v280_v8  ;;  %320 = vmatpush.msra.mxu1 %v281_v9  ;;  %v262_v26 = vld [vmem:[#allocation5 + $0x20] sm:$0xff]  ;;  %v263_v27 = vld [vmem:[#allocation5 + $0x28] sm:$0xff]  ;;  %v260_v28 = vld [vmem:[#allocation5 + $0x10] sm:$0xff]  ;;  %p696_p3 = pnand %p695_p1, %p880_p4  ;;  %p701_p8 = por %p700_p7, %p699_p12 }
  0x3c   : > { %v261_v29 = vld [vmem:[#allocation5 + $0x18] sm:$0xff]  ;;  %v258_v30 = vld [vmem:[#allocation5] sm:$0xff]  ;;  %v259_v31 = vld [vmem:[#allocation5 + $0x8] sm:$0xff] }
  0x3d   : > { %301 = vmatpush.msra.mxu0 %v278_v10  ;;  %321 = vmatpush.msra.mxu1 %v279_v11  ;;  %v257_v32 = vld [vmem:[%s216_s28] sm:$0xff]  ;;  %v290_v33 = vld [vmem:[#allocation7] sm:$0x3]  ;;  %p697_p5 = pneg %p696_p3 }
  0x3e   : > { %v292_v34 = vperm.slane %v290_v33, 0  ;;  %v293_v35 = vperm.slane %v290_v33, 1 }
  0x3f   : > { %302 = vmatpush.msra.mxu0 %v276_v12  ;;  %322 = vmatpush.msra.mxu1 %v277_v13  ;;  %p702_p9 = pnand %p701_p8, %p697_p5 }
  0x41   : > { %303 = vmatpush.msra.mxu0 %v274_v14  ;;  %323 = vmatpush.msra.mxu1 %v275_v15 }
  0x43   : > { %304 = vmatpush.msra.mxu0 %v272_v16  ;;  %324 = vmatpush.msra.mxu1 %v273_v17 }
  0x45   : > { %305 = vmatpush.msra.mxu0 %v270_v18  ;;  %325 = vmatpush.msra.mxu1 %v271_v19 }
  0x47   : > { %306 = vmatpush.msra.mxu0 %v268_v20  ;;  %326 = vmatpush.msra.mxu1 %v269_v21 }
  0x49   : > { %307 = vmatpush.msra.mxu0 %v266_v22  ;;  %327 = vmatpush.msra.mxu1 %v267_v23 }
  0x4b   : > { %308 = vmatpush.msra.mxu0 %v264_v24  ;;  %328 = vmatpush.msra.mxu1 %v265_v25 }
  0x4d   : > { %309 = vmatpush.msra.mxu0 %v262_v26  ;;  %329 = vmatpush.msra.mxu1 %v263_v27 }
  0x4f   : > { %310 = vmatpush.msra.mxu0 %v260_v28  ;;  %330 = vmatpush.msra.mxu1 %v261_v29 }
  0x51   : > { %311 = vmatpush.msra.mxu0 %v258_v30  ;;  %331 = vmatpush.msra.mxu1 %v259_v31 }
  0x52   : > { %312 = vmatmul.f32.vlgmr.msra.gmra.mxu0 %v257_v32  ;;  %332 = vmatmul.f32.vlgmr.msra.gmra.mxu1 %v257_v32 }
  0xcf   : > { %v313_v36 = vpop.f32.mrf.mxu0  ;;  %v333_v37 = vpop.f32.mrf.mxu1 }
  0xd0   : > { %v314_v38 = vadd.f32 %v313_v36, %v292_v34  ;;  %v334_v39 = vadd.f32 %v333_v37, %v293_v35 }
  0xd2   : > { %336 = vst [vmem:[%s249_s9] sm:$0xff] %v314_v38 }
  0xd3   : > { %337 = vst [vmem:[%s256_s24] sm:$0xff] %v334_v39 }
  0xd4   : > { %705 = shalt.err (!%p702_p9)
}
  0xd5   : > { %524 = dma.vmem_to_hbm [thread:$0]  (%p880_p4), %s357_s10, 128, %s359_s21, %s339_s12  }
  0xd6   : > { %s344_s5 = scalar_lea.sflag [#allocation10], %s911_s14  ;;  %s720_s6 = sshra.s32 %s943_s22, 4  ;;  %s721_s6 = int_to_ptr.hbm [resolvable:$true] %s720_s6 }
  0xd7   : > { %s722_s7 = scalar_lea.hbm %s721_s6, 8  ;;  %s726_s27 = scalar_lea.hbm %s993_s4, 16 }
  0xd8   : > { %p723_p10 = scmp.ne.s32.totalorder %s721_s6, %s722_s7  ;;  %p727_p0 = scmp.lt.s32.totalorder %s721_s6, %s993_s4 }
  0xd9   : > { %p728_p2 = scmp.lt.s32.totalorder %s726_s27, %s722_s7 }
  0xda   : > { %p724_p13 = pnand %p723_p10, %p880_p4 }
  0xdb   : > { %p729_p1 = por %p728_p2, %p727_p0 }
  0xdc   : > { %p725_p11 = pneg %p724_p13 }
  0xde   : > { %p730_p3 = pnand %p729_p1, %p725_p11 }
  0xe0   : > { %733 = shalt.err (!%p730_p3)
}
  0xe1   : > { %525 = dma.vmem_to_hbm [thread:$0]  (%p880_p4), %s371_s25, 128, %s943_s22, %s344_s5  }
  0xe2 PF: > { %s384_s14 = sand.u32 1, %s768_s15   ;;  %p1000_p5 = scmp.ge.s32.totalorder %s780_s18, 2 }
  0xe3   : > { %s385_s10 = scalar_lea.sflag [#allocation4], %s384_s14 }
  0xe4   : > { %p540_p12 = pnand %p1000_p5, %p884_p6 }
  0xe6   : > { %p541_p7 = pneg %p540_p12 }
  0xe8   : > { %759 = dma.done.wait (%p541_p7), %s385_s10, 128  }
  0xe9   : > { %761 = vsyncadd (%p541_p7), %s385_s10, 4294967168  ;;  %s395_s21 = scalar_lea.sflag [#allocation10], %s384_s14 }
  0xea   : > { %763 = dma.done.wait (%p541_p7), %s395_s21, 128  }
  0xeb   : > { %765 = vsyncadd (%p541_p7), %s395_s21, 4294967168  ;;  %p22_p4 = scmp.ge.s32.totalorder %s854_s8, 4   ;;  %s1001_s15 = smov %s772_s16 }
  0xec   : > { %s1002_s16 = smov %s776_s17  ;;  %s1003_s17 = smov %s865_s11 }
  0xed   : > { %s1004_s18 = smov %s854_s8  ;;  %24 = sbr.rel (!%p22_p4) target bundleno = 8 (0x8), region = 102 }
  0xf2   :  { %401 = vsyncpa [#allocation3], 1 }
  0xf3   :  { %403 = vsyncpa [#allocation3 + $0x1], 1 }
  0xf4   :  { %404 = vsyncpa [#allocation6], 1 }
  0xf5   :  { %405 = vsyncpa [#allocation4], 1 }
  0xf6   :  { %407 = vsyncpa [#allocation4 + $0x1], 1 }
  0xf7   :  { %408 = vsyncpa [#allocation10], 1 }
  0xf8   :  { %410 = vsyncpa [#allocation10 + $0x1], 1 }

</bundles_post_ra>
